<compile_context>
chip_gen: v6e
topology: v6e:2x2x1
jax: 0.10.0
libtpu: 0.0.40
codegen_flags: <defaults>
</compile_context>

<pallas_src>
import functools

import jax
import jax.numpy as jnp
from jax import lax
from jax.experimental import pallas as pl
from jax.experimental.pallas import tpu as pltpu

EPS = 1e-5
_MAX_APPLY_TILE = 512     # pass-2 lanes/tile (review: 512 keeps ~85% of HBM
                          # roofline and bounds pool-matrix FLOPs and VMEM)
_MAX_STATS_TILE = 4096    # pass-1 lanes/tile (no pool matrix, tiny outputs)
_MAX_FALLBACK_HW = 8192   # guard for the whole-image fallback tile


# ----------------------------- kernels --------------------------------------

def _bn_stats_kernel(x_ref, sum_ref, css_ref):
    """Per-tile BN partials: channel sum and tile-centered sum of squares."""
    x = x_ref[0]                                    # (C, TS1) f32
    ts = x.shape[1]
    s1 = jnp.sum(x, axis=1, keepdims=True)          # (C, 1)
    d = x - s1 * (1.0 / ts)                         # center with the tile mean
    css = jnp.sum(d * d, axis=1, keepdims=True)     # (C, 1)
    sum_ref[...] = s1[None, None]                   # -> (1, 1, C, 1)
    css_ref[...] = css[None, None]


def _apply_kernel(x_ref, scale_ref, shift_ref, w_ref, p_ref, out_ref, *,
                  conv_first):
    """BN + ReLU (f32, VPU), then 1x1 conv and 2x2 avg-pool on the MXU with
    bf16 operands / f32 accumulation.  conv_first=True applies the channel
    matmul before the pool (cheaper when Cout < C); otherwise pool-first."""
    x = x_ref[0]                                                  # (C, TS) f32
    y = jnp.maximum(x * scale_ref[...] + shift_ref[...], 0.0)     # BN + ReLU
    y = y.astype(jnp.bfloat16)
    if conv_first:
        z = jnp.dot(w_ref[...], y, preferred_element_type=jnp.float32)
        res = jnp.dot(z.astype(jnp.bfloat16), p_ref[...],
                      preferred_element_type=jnp.float32)         # (Cout, TS/4)
    else:
        pooled = jnp.dot(y, p_ref[...], preferred_element_type=jnp.float32)
        res = jnp.dot(w_ref[...], pooled.astype(jnp.bfloat16),
                      preferred_element_type=jnp.float32)         # (Cout, TS/4)
    while res.ndim < len(out_ref.shape):      # add leading unit dims only
        res = res[None]
    out_ref[...] = res.astype(out_ref.dtype)


# ----------------------------- tiling helpers --------------------------------

def _choose_stats_tile(hw, max_tile=_MAX_STATS_TILE):
    """Largest lane tile (multiple of 128, or the full axis) dividing H*W."""
    if hw <= max_tile:
        return hw
    t = (max_tile // 128) * 128
    while t >= 128:
        if hw % t == 0:
            return t
        t -= 128
    return hw


def _choose_apply_tile(hw, w, max_tile=_MAX_APPLY_TILE):
    """Pass-2 tile along the flattened H*W axis.

    The tile must cover whole 2-row groups (multiple of 2*W), divide H*W, and
    keep the *input* lane dim a multiple of 128 (or be the full axis).  The
    pooled lane dim (tile//4) may be unaligned; the wrapper then uses the
    tile-major staging output layout."""
    if hw <= max_tile:
        return hw
    step = 2 * w
    g = step
    while g % 128:            # g = lcm(2*W, 128); terminates (<= 64 iters)
        g += step
    if hw % g:
        return hw             # no lane-aligned row-group tile divides H*W
    # Accept one g even if slightly above max_tile rather than whole-image.
    t = max(g, (max_tile // g) * g)
    while hw % t:
        t -= g                # terminates because hw % g == 0
    return t


def _pool_matrix(ts, w):
    """(TS, TS//4) 0/0.25 matrix implementing a 2x2 average pool of a
    row-major flattened (rows, W) tile that starts on an even row."""
    wp = w // 2
    s = jnp.arange(ts, dtype=jnp.int32)
    q_of_s = (s // (2 * w)) * wp + (s % w) // 2
    q = jnp.arange(ts // 4, dtype=jnp.int32)
    return jnp.where(q_of_s[:, None] == q[None, :], 0.25, 0.0)


# ----------------------------- wrapper ---------------------------------------

def transition_forward(x_nchw, gamma, beta, conv_w, eps=EPS):
    """x_nchw: (N, C, H, W); conv_w: (Cout, C, 1, 1)."""
    N, C, H, W = x_nchw.shape
    assert H % 2 == 0 and W % 2 == 0, "2x2 avg-pool assumes even spatial dims"
    Hp, Wp = H // 2, W // 2
    HW, HWp = H * W, Hp * Wp
    Cout = conv_w.shape[0]

    x_flat = x_nchw.reshape(N, C, HW).astype(jnp.float32)    # contiguous: free
    w2 = conv_w.reshape(Cout, C).astype(jnp.float32)

    # ---- pass 1: streamed per-tile BN statistics (its own, larger tile) -----
    ts1 = _choose_stats_tile(HW)
    ns1 = HW // ts1
    part_sum, part_css = pl.pallas_call(
        _bn_stats_kernel,
        out_shape=(jax.ShapeDtypeStruct((N, ns1, C, 1), jnp.float32),
                   jax.ShapeDtypeStruct((N, ns1, C, 1), jnp.float32)),
        grid=(N, ns1),
        in_specs=[pl.BlockSpec((1, C, ts1), lambda n, s: (n, 0, s))],
        out_specs=(pl.BlockSpec((1, 1, C, 1), lambda n, s: (n, s, 0, 0)),
                   pl.BlockSpec((1, 1, C, 1), lambda n, s: (n, s, 0, 0))),
        compiler_params=pltpu.CompilerParams(
            dimension_semantics=("parallel", "parallel")),
    )(x_flat)

    # ---- tiny cross-tile combine (parallel-Welford; numerically stable) -----
    n_total = float(N * HW)
    ts1_f = float(ts1)
    tile_sum = part_sum[..., 0]                   # (N, ns1, C)
    tile_css = part_css[..., 0]
    mu_i = tile_sum * (1.0 / ts1_f)               # per-tile means
    mean = mu_i.mean(axis=(0, 1))                 # mean of equal-size tile means
    var = (tile_css.sum(axis=(0, 1))
           + (ts1_f * (mu_i - mean) ** 2).sum(axis=(0, 1))) / n_total   # biased
    inv_std = lax.rsqrt(var + eps)
    scale = (gamma.astype(jnp.float32) * inv_std).reshape(C, 1)
    shift = (beta.astype(jnp.float32) - mean * gamma.astype(jnp.float32)
             * inv_std).reshape(C, 1)

    # ---- pass 2: BN + ReLU + 1x1 conv + 2x2 pool, tiled & pipelined ---------
    ts = _choose_apply_tile(HW, W)
    if ts == HW and HW > _MAX_FALLBACK_HW:
        # TODO(synk): factored per-row-group pool would lift this restriction.
        raise ValueError(
            f"unsupported spatial size H={H}, W={W}: whole-image pooling "
            "fallback would need an O(HW^2) pool matrix")
    ns = HW // ts
    tso = ts // 4
    conv_first = Cout < C                       # real DenseNet: Cout = C // 2

    w2_mx = w2.astype(jnp.bfloat16)             # bf16 MXU operands, f32 accum
    pool_mat = _pool_matrix(ts, W).astype(jnp.bfloat16)   # 0.25 exact in bf16

    kernel = functools.partial(_apply_kernel, conv_first=conv_first)
    # Constants stay resident and are single-buffered; only the streamed x
    # tile is double-buffered by the pipeline.
    const = dict(pipeline_mode=pl.Buffered(1))
    in_specs = [
        pl.BlockSpec((1, C, ts), lambda n, s: (n, 0, s)),
        pl.BlockSpec((C, 1), lambda n, s: (0, 0), **const),
        pl.BlockSpec((C, 1), lambda n, s: (0, 0), **const),
        pl.BlockSpec((Cout, C), lambda n, s: (0, 0), **const),
        pl.BlockSpec((ts, tso), lambda n, s: (0, 0), **const),
    ]

    flat_out = (tso % 128 == 0) or (ts == HW)
    if flat_out:
        out_shape = jax.ShapeDtypeStruct((N, Cout, HWp), jnp.float32)
        out_spec = pl.BlockSpec((1, Cout, tso), lambda n, s: (n, 0, s))
    else:
        # Lane-unaligned pooled tiles: write a tile-major staging layout whose
        # block last-two dims equal the full array dims; one small XLA
        # transpose of the (4x smaller) output restores NCHW afterwards.
        out_shape = jax.ShapeDtypeStruct((N, ns, Cout, tso), jnp.float32)
        out_spec = pl.BlockSpec((1, 1, Cout, tso), lambda n, s: (n, s, 0, 0))

    out = pl.pallas_call(
        kernel,
        out_shape=out_shape,
        grid=(N, ns),
        in_specs=in_specs,
        out_specs=out_spec,
        # NOTE: no blanket vmem_limit_bytes; the default scoped limit is ample
        # for these block sizes, and 64 MiB would be v7x's entire per-TC VMEM.
        compiler_params=pltpu.CompilerParams(
            dimension_semantics=("parallel", "parallel")),
    )(x_flat, scale, shift, w2_mx, pool_mat)

    if flat_out:
        return out.reshape(N, Cout, Hp, Wp)
    return jnp.transpose(out, (0, 2, 1, 3)).reshape(N, Cout, Hp, Wp)


# ----------------------------- reference & test ------------------------------

def reference(x, gamma, beta, conv_w, eps=EPS):
    """Pure-JAX reference matching PyTorch training-mode forward."""
    mean = x.mean(axis=(0, 2, 3), keepdims=True)
    var = x.var(axis=(0, 2, 3), keepdims=True)    # biased
    g = gamma.reshape(1, -1, 1, 1)
    b = beta.reshape(1, -1, 1, 1)
    y = g * (x - mean) / jnp.sqrt(var + eps) + b
    y = jnp.maximum(y, 0.0)
    w2 = conv_w.reshape(conv_w.shape[0], conv_w.shape[1])
    out = jnp.einsum("oc,nchw->nohw", w2, y)
    N, Co, H, W = out.shape
    return out.reshape(N, Co, H // 2, 2, W // 2, 2).mean(axis=(3, 5))


def _run_case(key, n, c, cout, h, w):
    kx, kw = jax.random.split(key)
    x = jax.random.normal(kx, (n, c, h, w), dtype=jnp.float32)
    # Deterministic params mirroring fresh nn.BatchNorm2d / nn.Conv2d(bias=False)
    gamma = jnp.ones((c,), dtype=jnp.float32)
    beta = jnp.zeros((c,), dtype=jnp.float32)
    bound = 1.0 / (c ** 0.5)
    conv_w = jax.random.uniform(kw, (cout, c, 1, 1),
                                minval=-bound, maxval=bound, dtype=jnp.float32)

    out = jax.block_until_ready(jax.jit(transition_forward)(x, gamma, beta, conv_w))
    ref = reference(x, gamma, beta, conv_w)
    assert out.shape == (n, cout, h // 2, w // 2), out.shape
    # bf16 MXU operands (per the perf review) => tolerance relaxed vs pure f32.
    err = float(jnp.max(jnp.abs(out - ref)))
    assert jnp.allclose(out, ref, rtol=2e-2, atol=2e-2), err


if __name__ == "__main__":
    key = jax.random.PRNGKey(0)
    k1, k2, k3 = jax.random.split(key, 3)
    _run_case(k1, 2, 4, 8, 16, 16)    # spec's toy config: pool-first, one tile
    _run_case(k2, 2, 6, 3, 32, 32)    # Cout < C: conv-first, 2 tiles, flat out
    _run_case(k3, 1, 4, 2, 48, 48)    # lane-unaligned pooled tile: staged out
    print("KERNEL_OK")
</pallas_src>

<mosaic_0001>
module attributes {stable_mosaic.version = 11 : i64} {
  func.func @_bn_stats_kernel(%arg0: i32, %arg1: i32, %arg2: memref<1x4x256xf32, #tpu.memory_space<vmem>>, %arg3: memref<1x1x4x1xf32, #tpu.memory_space<vmem>>, %arg4: memref<1x1x4x1xf32, #tpu.memory_space<vmem>>) attributes {dimension_semantics = [#tpu.dimension_semantics<parallel>, #tpu.dimension_semantics<parallel>], iteration_bounds = array<i64: 2, 1>, scalar_prefetch = 0 : i64, scratch_operands = 0 : i64, tpu.core_type = #tpu.core_type<tc>, window_params = [{transform_indices = @transform_0, window_bounds = array<i64: 1, 4, 256>}, {transform_indices = @transform_1, window_bounds = array<i64: 1, 1, 4, 1>}, {transform_indices = @transform_2, window_bounds = array<i64: 1, 1, 4, 1>}]} {
    %c0 = arith.constant 0 : index
    %c0_0 = arith.constant 0 : index
    %c0_1 = arith.constant 0 : index
    %0 = vector.load %arg2[%c0, %c0_0, %c0_1] : memref<1x4x256xf32, #tpu.memory_space<vmem>>, vector<1x4x256xf32>
    %1 = vector.shape_cast %0 : vector<1x4x256xf32> to vector<4x256xf32>
    %cst = arith.constant dense<0.000000e+00> : vector<4xf32>
    %2 = vector.multi_reduction <add>, %1, %cst [1] : vector<4x256xf32> to vector<4xf32>
    %3 = vector.shape_cast %2 : vector<4xf32> to vector<4x1xf32>
    %cst_2 = arith.constant 3.906250e-03 : f32
    %4 = vector.broadcast %cst_2 : f32 to vector<4x1xf32>
    %5 = arith.mulf %3, %4 : vector<4x1xf32>
    %6 = vector.broadcast %5 : vector<4x1xf32> to vector<4x256xf32>
    %7 = arith.subf %1, %6 : vector<4x256xf32>
    %8 = arith.mulf %7, %7 : vector<4x256xf32>
    %cst_3 = arith.constant dense<0.000000e+00> : vector<4xf32>
    %9 = vector.multi_reduction <add>, %8, %cst_3 [1] : vector<4x256xf32> to vector<4xf32>
    %10 = vector.shape_cast %9 : vector<4xf32> to vector<4x1xf32>
    %11 = vector.shape_cast %3 : vector<4x1xf32> to vector<1x1x4x1xf32>
    %c0_4 = arith.constant 0 : index
    %c0_5 = arith.constant 0 : index
    %c0_6 = arith.constant 0 : index
    %c0_7 = arith.constant 0 : index
    %12 = vector.load %arg3[%c0_4, %c0_5, %c0_6, %c0_7] : memref<1x1x4x1xf32, #tpu.memory_space<vmem>>, vector<1x1x4x1xf32>
    tpu.vector_store %arg3[%c0_4, %c0_5, %c0_6, %c0_7], %11 {strides = array<i32>} : memref<1x1x4x1xf32, #tpu.memory_space<vmem>>, vector<1x1x4x1xf32>,
    %13 = vector.shape_cast %10 : vector<4x1xf32> to vector<1x1x4x1xf32>
    %c0_8 = arith.constant 0 : index
    %c0_9 = arith.constant 0 : index
    %c0_10 = arith.constant 0 : index
    %c0_11 = arith.constant 0 : index
    %14 = vector.load %arg4[%c0_8, %c0_9, %c0_10, %c0_11] : memref<1x1x4x1xf32, #tpu.memory_space<vmem>>, vector<1x1x4x1xf32>
    tpu.vector_store %arg4[%c0_8, %c0_9, %c0_10, %c0_11], %13 {strides = array<i32>} : memref<1x1x4x1xf32, #tpu.memory_space<vmem>>, vector<1x1x4x1xf32>,
    return
  }
  func.func @transform_0(%arg0: i32, %arg1: i32) -> (i32, i32, i32) {
    %c0_i32 = arith.constant 0 : i32
    %c0_i32_0 = arith.constant 0 : i32
    return %arg0, %c0_i32, %arg1 : i32, i32, i32
  }
  func.func @transform_1(%arg0: i32, %arg1: i32) -> (i32, i32, i32, i32) {
    %c0_i32 = arith.constant 0 : i32
    %c0_i32_0 = arith.constant 0 : i32
    %c0_i32_1 = arith.constant 0 : i32
    return %arg0, %arg1, %c0_i32, %c0_i32_0 : i32, i32, i32, i32
  }
  func.func @transform_2(%arg0: i32, %arg1: i32) -> (i32, i32, i32, i32) {
    %c0_i32 = arith.constant 0 : i32
    %c0_i32_0 = arith.constant 0 : i32
    %c0_i32_1 = arith.constant 0 : i32
    return %arg0, %arg1, %c0_i32, %c0_i32_0 : i32, i32, i32, i32
  }
}

module attributes {stable_mosaic.version = 11 : i64} {
  func.func @_apply_kernel(%arg0: i32, %arg1: i32, %arg2: memref<1x4x256xf32, #tpu.memory_space<vmem>>, %arg3: memref<4x1xf32, #tpu.memory_space<vmem>>, %arg4: memref<4x1xf32, #tpu.memory_space<vmem>>, %arg5: memref<8x4xbf16, #tpu.memory_space<vmem>>, %arg6: memref<256x64xbf16, #tpu.memory_space<vmem>>, %arg7: memref<1x8x64xf32, #tpu.memory_space<vmem>>) attributes {dimension_semantics = [#tpu.dimension_semantics<parallel>, #tpu.dimension_semantics<parallel>], iteration_bounds = array<i64: 2, 1>, scalar_prefetch = 0 : i64, scratch_operands = 0 : i64, tpu.core_type = #tpu.core_type<tc>, window_params = [{transform_indices = @transform_0, window_bounds = array<i64: 1, 4, 256>}, {pipeline_mode = #tpu.pipeline_mode<synchronous>, transform_indices = @transform_1, window_bounds = array<i64: 4, 1>}, {pipeline_mode = #tpu.pipeline_mode<synchronous>, transform_indices = @transform_2, window_bounds = array<i64: 4, 1>}, {pipeline_mode = #tpu.pipeline_mode<synchronous>, transform_indices = @transform_3, window_bounds = array<i64: 8, 4>}, {pipeline_mode = #tpu.pipeline_mode<synchronous>, transform_indices = @transform_4, window_bounds = array<i64: 256, 64>}, {transform_indices = @transform_5, window_bounds = array<i64: 1, 8, 64>}]} {
    %c0 = arith.constant 0 : index
    %c0_0 = arith.constant 0 : index
    %c0_1 = arith.constant 0 : index
    %0 = vector.load %arg2[%c0, %c0_0, %c0_1] : memref<1x4x256xf32, #tpu.memory_space<vmem>>, vector<1x4x256xf32>
    %1 = vector.shape_cast %0 : vector<1x4x256xf32> to vector<4x256xf32>
    %c0_2 = arith.constant 0 : index
    %c0_3 = arith.constant 0 : index
    %2 = vector.load %arg3[%c0_2, %c0_3] : memref<4x1xf32, #tpu.memory_space<vmem>>, vector<4x1xf32>
    %3 = vector.broadcast %2 : vector<4x1xf32> to vector<4x256xf32>
    %4 = arith.mulf %1, %3 : vector<4x256xf32>
    %c0_4 = arith.constant 0 : index
    %c0_5 = arith.constant 0 : index
    %5 = vector.load %arg4[%c0_4, %c0_5] : memref<4x1xf32, #tpu.memory_space<vmem>>, vector<4x1xf32>
    %6 = vector.broadcast %5 : vector<4x1xf32> to vector<4x256xf32>
    %7 = arith.addf %4, %6 : vector<4x256xf32>
    %cst = arith.constant 0.000000e+00 : f32
    %8 = vector.broadcast %cst : f32 to vector<4x256xf32>
    %9 = arith.maximumf %7, %8 : vector<4x256xf32>
    %10 = arith.truncf %9 : vector<4x256xf32> to vector<4x256xbf16>
    %c0_6 = arith.constant 0 : index
    %c0_7 = arith.constant 0 : index
    %11 = vector.load %arg6[%c0_6, %c0_7] : memref<256x64xbf16, #tpu.memory_space<vmem>>, vector<256x64xbf16>
    %cst_8 = arith.constant dense<0.000000e+00> : vector<4x64xf32>
    %12 = tpu.matmul %10, %11, %cst_8 {dimension_numbers = #tpu.dot_dimension_numbers<[1], [0], [0], [1], [0, 0, 1, 1], [], []>} : vector<4x256xbf16>, vector<256x64xbf16>, vector<4x64xf32> -> vector<4x64xf32>
    %c0_9 = arith.constant 0 : index
    %c0_10 = arith.constant 0 : index
    %13 = vector.load %arg5[%c0_9, %c0_10] : memref<8x4xbf16, #tpu.memory_space<vmem>>, vector<8x4xbf16>
    %14 = arith.truncf %12 : vector<4x64xf32> to vector<4x64xbf16>
    %cst_11 = arith.constant dense<0.000000e+00> : vector<8x64xf32>
    %15 = tpu.matmul %13, %14, %cst_11 {dimension_numbers = #tpu.dot_dimension_numbers<[1], [0], [0], [1], [0, 0, 1, 1], [], []>} : vector<8x4xbf16>, vector<4x64xbf16>, vector<8x64xf32> -> vector<8x64xf32>
    %16 = vector.shape_cast %15 : vector<8x64xf32> to vector<1x8x64xf32>
    %c0_12 = arith.constant 0 : index
    %c0_13 = arith.constant 0 : index
    %c0_14 = arith.constant 0 : index
    %17 = vector.load %arg7[%c0_12, %c0_13, %c0_14] : memref<1x8x64xf32, #tpu.memory_space<vmem>>, vector<1x8x64xf32>
    tpu.vector_store %arg7[%c0_12, %c0_13, %c0_14], %16 {strides = array<i32>} : memref<1x8x64xf32, #tpu.memory_space<vmem>>, vector<1x8x64xf32>,
    return
  }
  func.func @transform_0(%arg0: i32, %arg1: i32) -> (i32, i32, i32) {
    %c0_i32 = arith.constant 0 : i32
    %c0_i32_0 = arith.constant 0 : i32
    return %arg0, %c0_i32, %arg1 : i32, i32, i32
  }
  func.func @transform_1(%arg0: i32, %arg1: i32) -> (i32, i32) {
    %c0_i32 = arith.constant 0 : i32
    %c0_i32_0 = arith.constant 0 : i32
    %c0_i32_1 = arith.constant 0 : i32
    return %c0_i32, %c0_i32_0 : i32, i32
  }
  func.func @transform_2(%arg0: i32, %arg1: i32) -> (i32, i32) {
    %c0_i32 = arith.constant 0 : i32
    %c0_i32_0 = arith.constant 0 : i32
    %c0_i32_1 = arith.constant 0 : i32
    return %c0_i32, %c0_i32_0 : i32, i32
  }
  func.func @transform_3(%arg0: i32, %arg1: i32) -> (i32, i32) {
    %c0_i32 = arith.constant 0 : i32
    %c0_i32_0 = arith.constant 0 : i32
    %c0_i32_1 = arith.constant 0 : i32
    return %c0_i32, %c0_i32_0 : i32, i32
  }
  func.func @transform_4(%arg0: i32, %arg1: i32) -> (i32, i32) {
    %c0_i32 = arith.constant 0 : i32
    %c0_i32_0 = arith.constant 0 : i32
    %c0_i32_1 = arith.constant 0 : i32
    return %c0_i32, %c0_i32_0 : i32, i32
  }
  func.func @transform_5(%arg0: i32, %arg1: i32) -> (i32, i32, i32) {
    %c0_i32 = arith.constant 0 : i32
    %c0_i32_0 = arith.constant 0 : i32
    return %arg0, %c0_i32, %arg1 : i32, i32, i32
  }
}

</mosaic_0001>

<bundles_post_ra>
// kernel: transition_forward.2
= control target key start
LH: loop header
LB: loop body
LE: loop exit
PB: predicated region body
PF: predicated region fallthrough
CT: control target
= control target key end

     0   :  { %s426_s9 = smov 0   ;;  %s428_s10 = smov 0   ;;  %s470_s0 = inlined_call_operand.vmem [shape: f32[2,4,256], index: 0, kind: input, shape index: {}]   ;;  %s471_s1 = inlined_call_operand.vmem [shape: f32[2,1,4,1], index: 1, kind: output, shape index: {0}]   ;;  %s472_s2 = inlined_call_operand.vmem [shape: f32[2,1,4,1], index: 2, kind: output, shape index: {1}]  }
   0x1   :  { %s430_s11 = smov 0  }
   0x2 LB: > { %s25_s12 = sadd.s32 1, %s404_s10  ;;  %p352_p0 = scmp.ge.s32.totalorder %s408_s11, 1  ;;  %s408_s11 = sphi %s430_s11, %s13_s11   ;;  %s404_s10 = sphi %s428_s10, %s474_s10   ;;  %s400_s9 = sphi %s426_s9, %s473_s9  }
   0x3   : > { %p27_p1 = scmp.ge.s32.totalorder %s25_s12, 2  ;;  %p138_p2 = scmp.lt.s32.totalorder %s408_s11, 3 }
   0x5   : > { %s476_s12 = smov (%p27_p1, %s25_s12), 0  ;;  %p139_p3 = pnand %p352_p0, %p138_p2 }
   0x6   : > { %p174_p4 = scmp.lt.s32.totalorder (!%p139_p3), %s400_s9, 1 }
   0x7   : > { %142 = sbr.rel (%p139_p3) target bundleno = 311 (0x137), region = 24 }
   0xc   : > { %s478_s9 = smov (!%p174_p4, %s400_s9), 1  ;;  %vm201_vm0 = vcmask 1043456   ;;  %v410_v5 = vmov 839922192   ;;  %v212_v7 = vlaneseq  ;;  %vm227_vm1 = vcmask 3072  }
   0xd   : > { %s359_s13 = sshll.u32 %s478_s9, 3  ;;  %v210_v6 = vunpack.c.l.s4 %v410_v5  ;;  %s355_s17 = sshll.u32 %s478_s9, 2 }
   0xe   : > { %s181_s16 = scalar_lea.vmem %s470_s0, %s359_s13  ;;  %v213_v9 = vshrl.u32 %v212_v7, 7  ;;  %s189_s20 = scalar_lea.vmem %s471_s1, %s355_s17 }
   0xf   : > { %v197_v0 = vld [vmem:[%s181_s16] sm:$0xff]  ;;  %v211_v8 = vunpack.c.0.s8 %v210_v6  ;;  %s196_s23 = scalar_lea.vmem %s472_s2, %s355_s17 }
  0x10   : > { %v199_v1 = vcombine.high %v197_v0, %v197_v0  ;;  %v202_v2 = vsel %vm201_vm0, %v197_v0, 0.0 }
  0x11   : > { %v214_v10 = vsub.s32 %v211_v8, %v213_v9 }
  0x12   : > { %v203_v3 = vsel %vm201_vm0, %v199_v1, 0.0 }
  0x13   : > { %v204_v4 = vadd.f32 %v203_v3, %v202_v2 }
  0x15   : > { %205 = vadd.xlane.f32.xlu0 %v204_v4 }
  0x9e   : > { %v206_v11 = vpop.xlane.xlu0 %205 }
  0x9f   : > { %v207_v12 = vmul.f32 0.00390625, %v206_v11  ;;  %228 = vst.msk [vmem:[%s189_s20] sm:$0xf] %vm227_vm1, %v206_v11 }
  0xa1   : > { %v215_v13 = vrot.slane %v207_v12, %v214_v10 }
  0xa3   : > { %v217_v14 = vsub.f32 %v197_v0, %v215_v13 }
  0xa5   : > { %v218_v15 = vmul.f32 %v217_v14, %v217_v14 }
  0xa7   : > { %v220_v16 = vcombine.high %v218_v15, %v218_v15  ;;  %v222_v17 = vsel %vm201_vm0, %v218_v15, 0.0 }
  0xa9   : > { %v223_v18 = vsel %vm201_vm0, %v220_v16, 0.0 }
  0xaa   : > { %v224_v19 = vadd.f32 %v223_v18, %v222_v17 }
  0xac   : > { %225 = vadd.xlane.f32.xlu0 %v224_v19 }
 0x135   : > { %v226_v20 = vpop.xlane.xlu0 %225 }
 0x136   : > { %229 = vst.msk [vmem:[%s196_s23] sm:$0xf] %vm227_vm1, %v226_v20 }
 0x137 PF: > { %s13_s11 = sadd.s32 1, %s408_s11   ;;  %s473_s9 = smov %s404_s10 }
 0x138   : > { %p10_p5 = scmp.ge.s32.totalorder %s13_s11, 4   ;;  %s474_s10 = smov %s476_s12 }
 0x13a   :  { %12 = sbr.rel (!%p10_p5) target bundleno = 2 (0x2), region = 66 }

// kernel: transition_forward.3
= control target key start
LH: loop header
LB: loop body
LE: loop exit
PB: predicated region body
PF: predicated region fallthrough
CT: control target
= control target key end

     0   :  { %s753_s18 = smov 0   ;;  %s755_s19 = smov 0   ;;  %s854_s0 = inlined_call_operand.vmem [shape: f32[2,4,256], index: 0, kind: input, shape index: {}]   ;;  %s855_s1 = inlined_call_operand.vmem [shape: f32[4,1], index: 1, kind: input, shape index: {}]   ;;  %s856_s2 = inlined_call_operand.vmem [shape: f32[4,1], index: 2, kind: input, shape index: {}]   ;;  %s857_s3 = inlined_call_operand.vmem [shape: bf16[8,4], index: 3, kind: input, shape index: {}]   ;;  %s858_s4 = inlined_call_operand.vmem [shape: bf16[256,64], index: 4, kind: input, shape index: {}]   ;;  %s859_s5 = inlined_call_operand.vmem [shape: f32[2,8,64], index: 5, kind: output, shape index: {}]  }
   0x1   :  { %s757_s20 = smov 0  }
   0x2 LB: > { %s27_s21 = sadd.s32 1, %s713_s19  ;;  %p596_p0 = scmp.ge.s32.totalorder %s717_s20, 1  ;;  %s717_s20 = sphi %s757_s20, %s15_s20   ;;  %s713_s19 = sphi %s755_s19, %s861_s19   ;;  %s709_s18 = sphi %s753_s18, %s860_s18  }
   0x3   : > { %p29_p1 = scmp.ge.s32.totalorder %s27_s21, 2  ;;  %p208_p2 = scmp.lt.s32.totalorder %s717_s20, 3 }
   0x5   : > { %s863_s21 = smov (%p29_p1, %s27_s21), 0  ;;  %p209_p3 = pnand %p596_p0, %p208_p2 }
   0x6   : > { %p243_p4 = scmp.lt.s32.totalorder (!%p209_p3), %s709_s18, 1 }
   0x7   : > { %212 = sbr.rel (%p209_p3) target bundleno = 555 (0x22b), region = 40 }
   0xc   : > { %v261_v0 = vld [vmem:[%s855_s1] sm:$0xf]  ;;  %v679_v1 = vld [vmem:[%s858_s4 + $0x78] sm:$0xff]   ;;  %v719_v2 = vmov 0   ;;  %v681_v5 = vld [vmem:[%s858_s4 + $0x70] sm:$0xff]   ;;  %v269_v21 = vlaneseq  ;;  %s865_s18 = smov (!%p243_p4, %s709_s18), 1 }
   0xd   : > { %678 = vset.pattern.permute.xlu0 %v719_v2  ;;  %v275_v3 = vld [vmem:[%s856_s2] sm:$0xf]  ;;  %620 = vmatprep.subr.bf16.mxu0 %v679_v1  ;;  %v680_v4 = vld [vmem:[%s858_s4 + $0x38] sm:$0xff]   ;;  %v682_v6 = vld [vmem:[%s858_s4 + $0x30] sm:$0xff]   ;;  %v720_v19 = vmov 839922192  }
   0xe   : > { %264 = vperm.xlu0 %678, %v261_v0   ;;  %621 = vmatpush3.bf16.msra.mxu0 %v680_v4  ;;  %v683_v7 = vld [vmem:[%s858_s4 + $0x68] sm:$0xff]   ;;  %v685_v9 = vld [vmem:[%s858_s4 + $0x60] sm:$0xff]   ;;  %v687_v11 = vld [vmem:[%s858_s4 + $0x58] sm:$0xff]   ;;  %v267_v20 = vunpack.c.l.s4 %v720_v19  ;;  %v270_v23 = vshrl.u32 %v269_v21, 7  ;;  %s619_s12 = sshll.u32 %s865_s18, 3  ;;  %v721_v36 = vmov 0.0  }
   0xf   : > { %622 = vmatprep.subr.bf16.mxu0 %v681_v5  ;;  %v684_v8 = vld [vmem:[%s858_s4 + $0x28] sm:$0xff]   ;;  %v686_v10 = vld [vmem:[%s858_s4 + $0x20] sm:$0xff]   ;;  %v688_v12 = vld [vmem:[%s858_s4 + $0x18] sm:$0xff]   ;;  %s250_s15 = scalar_lea.vmem %s854_s0, %s619_s12  ;;  %644 = vmatprep.subr.bf16.mxu1 %v721_v36  ;;  %vm722_vm0 = vmmov 0   ;;  %vm469_vm1 = vcmask 1041408   ;;  %vm465_vm2 = vcmask 31744   ;;  %s258_s24 = scalar_lea.vmem %s859_s5, %s619_s12 }
  0x10   : > { %v689_v13 = vld [vmem:[%s858_s4 + $0x50] sm:$0xff]   ;;  %v691_v15 = vld [vmem:[%s858_s4 + $0x48] sm:$0xff]   ;;  %v693_v17 = vld [vmem:[%s858_s4 + $0x40] sm:$0xff]   ;;  %v268_v22 = vunpack.c.0.s8 %v267_v20  ;;  %646 = vmatprep.mubr.msk.bf16.mxu1 %vm722_vm0, %v721_v36  ;;  %vm513_vm3 = vcmask 523264  }
  0x11   : > { %v690_v14 = vld [vmem:[%s858_s4 + $0x10] sm:$0xff]   ;;  %v692_v16 = vld [vmem:[%s858_s4 + $0x8] sm:$0xff]   ;;  %v694_v18 = vld [vmem:[%s858_s4] sm:$0xff]  }
  0x12   : > { %278 = vperm.xlu0 %678, %v275_v3   ;;  %623 = vmatpush3.bf16.msra.mxu0 %v682_v6  ;;  %v271_v24 = vsub.s32 %v268_v22, %v270_v23  ;;  %v260_v27 = vld [vmem:[%s250_s15] sm:$0xff] }
  0x13   : > { %624 = vmatprep.subr.bf16.mxu0 %v683_v7  ;;  %v463_v44 = vld [vmem:[%s857_s3] sm:$0xf] }
  0x16   : > { %625 = vmatpush3.bf16.msra.mxu0 %v684_v8 }
  0x17   : > { %626 = vmatprep.subr.bf16.mxu0 %v685_v9 }
  0x1a   : > { %627 = vmatpush3.bf16.msra.mxu0 %v686_v10 }
  0x1b   : > { %628 = vmatprep.subr.bf16.mxu0 %v687_v11 }
  0x1e   : > { %629 = vmatpush3.bf16.msra.mxu0 %v688_v12 }
  0x1f   : > { %630 = vmatprep.subr.bf16.mxu0 %v689_v13 }
  0x22   : > { %631 = vmatpush3.bf16.msra.mxu0 %v690_v14 }
  0x23   : > { %632 = vmatprep.subr.bf16.mxu0 %v691_v15 }
  0x26   : > { %633 = vmatpush3.bf16.msra.mxu0 %v692_v16 }
  0x27   : > { %634 = vmatprep.subr.bf16.mxu0 %v693_v17 }
  0x2a   : > { %635 = vmatpush3.bf16.msra.mxu0 %v694_v18 }
  0x89   : > { %v265_v25 = vpop.permute.xlu0 %264 }
  0x8a   : > { %v272_v26 = vrot.slane %v265_v25, %v271_v24 }
  0x8c   : > { %v274_v29 = vmul.f32 %v272_v26, %v260_v27 }
  0x8d   : > { %v279_v28 = vpop.permute.xlu0 %278 }
  0x8e   : > { %v286_v30 = vrot.slane %v279_v28, %v271_v24 }
  0x90   : > { %v288_v31 = vadd.f32 %v286_v30, %v274_v29 }
  0x92   : > { %v289_v32 = vmax.f32 %v288_v31, 0.0 }
  0x94   : > { %v291_v33 = vcombine.high %v289_v32, %v289_v32  ;;  %v293_v35 = vpack.c.bf16 %v289_v32, %v289_v32 }
  0x96   : > { %v294_v34 = vpack.c.bf16 %v291_v33, %v291_v33 }
  0x98   : > { %455 = vmatprep.mubr.bf16.mxu0 %v294_v34 }
  0x99   : > { %456 = vmatmul.mubr.bf16.vlgmr.msra.gmra.mxu0 %v293_v35 }
 0x159   : > { %v636_v37 = vpop.f32.mrf.mxu0 }
 0x15b   : > { %v637_v38 = vpop.f32.mrf.mxu0 }
 0x15c   : > { %v638_v39 = vadd.f32 %v637_v38, %v636_v37 }
 0x15d   : > { %v639_v40 = vpop.f32.mrf.mxu0 }
 0x15e   : > { %v464_v41 = vpack.c.bf16 %v638_v39, %v638_v39 }
 0x15f   : > { %v640_v42 = vpop.f32.mrf.mxu0 }
 0x160   : > { %v471_v43 = vsel %vm469_vm1, %v464_v41, 0 }
 0x161   : > { %645 = vmatpush3.bf16.msra.mxu1 %v471_v43 }
 0x164   : > { %647 = vmatmul.mubr.msk.bf16.vlgmr.msra.gmra.mxu1 %vm465_vm2, %v463_v44 }
 0x224   : > { %v507_v45 = vpop.f32.mrf.mxu1 }
 0x225   : > { %514 = vst.msk [vmem:[%s258_s24] sm:$0xff] %vm513_vm3, %v507_v45 }
 0x226   : > { %v648_v46 = vpop.f32.mrf.mxu1 }
 0x228   : > { %v510_v47 = vpop.f32.mrf.mxu1 }
 0x22a   : > { %v649_v48 = vpop.f32.mrf.mxu1 }
 0x22b PF: > { %s15_s20 = sadd.s32 1, %s717_s20   ;;  %s860_s18 = smov %s713_s19 }
 0x22c   : > { %p12_p5 = scmp.ge.s32.totalorder %s15_s20, 4   ;;  %s861_s19 = smov %s863_s21 }
 0x22e   :  { %14 = sbr.rel (!%p12_p5) target bundleno = 2 (0x2), region = 70 }

</bundles_post_ra>
